<compile_context>
chip_gen: v6e
topology: v6e:2x2x1
jax: 0.10.0
libtpu: 0.0.40
codegen_flags: <defaults>
</compile_context>

<pallas_src>
import functools

import jax
import jax.numpy as jnp
from jax.experimental import pallas as pl
from jax.experimental.pallas import tpu as pltpu


def _round_up(x: int, m: int) -> int:
    return (x + m - 1) // m * m


def _vmem_capacity_bytes() -> int:
    """Per-core VMEM capacity; conservative v7x default if query fails."""
    try:
        info = pltpu.get_tpu_info()
        cap = getattr(info, "vmem_capacity_bytes", None)
        if cap:
            return int(cap)
    except Exception:
        pass
    return 64 * 1024 * 1024


def _embedfc_kernel(x_ref, w1_ref, b1_ref, w2_ref, b2_ref, o_ref, h_ref,
                    *, approximate_gelu: bool):
    # x:  (TN, D)   f32    w1: (D, EP)    bf16   b1: (1, EP)   f32
    # w2: (EP, TC)  bf16   b2: (1, TC)    f32    o:  (TN, TC)  out_dtype
    # h (scratch): (TN, EP) bf16 -- hidden activation, reused across col tiles.
    j = pl.program_id(1)

    @pl.when(j == 0)
    def _():
        # Linear 1 on the MXU (bf16 inputs, f32 accumulation).  K = input_dim
        # is tiny so this matmul is cheap; the cast of x happens in-register.
        h = jnp.dot(x_ref[...].astype(jnp.bfloat16), w1_ref[...],
                    preferred_element_type=jnp.float32)
        h = h + b1_ref[...]                       # (1, EP) broadcast
        if approximate_gelu:
            # tanh form: the transcendental runs on the EUP slot (free-ish).
            c = jnp.float32(0.7978845608028654)   # sqrt(2/pi)
            h = 0.5 * h * (1.0 + jnp.tanh(c * (h + 0.044715 * h * h * h)))
        else:
            # Exact erf GELU -- matches torch.nn.GELU() default.
            inv_sqrt2 = jnp.float32(0.7071067811865476)
            h = 0.5 * h * (1.0 + jax.lax.erf(h * inv_sqrt2))
        h_ref[...] = h.astype(jnp.bfloat16)

    # Linear 2 on the MXU against the current column tile of w2.
    o = jnp.dot(h_ref[...], w2_ref[...], preferred_element_type=jnp.float32)
    o_ref[...] = (o + b2_ref[...]).astype(o_ref.dtype)


def prepare_embedfc_params(w1, b1, w2, b2):
    """Pad/cast parameters to the kernel layout ONCE (do not call per step).

    w1: (input_dim, embed_dim)   (transposed vs. torch's (out, in) layout)
    b1: (embed_dim,)
    w2: (embed_dim, embed_dim)
    b2: (embed_dim,)
    """
    input_dim, embed_dim = w1.shape
    ep = _round_up(embed_dim, 128)   # lane-dense hidden/output width

    # Zero padding keeps the math exact: padded hidden columns are GELU(0)=0
    # and multiply zero rows of w2; padded output columns are sliced off.
    w1_p = jnp.zeros((input_dim, ep), jnp.bfloat16).at[:, :embed_dim].set(
        w1.astype(jnp.bfloat16))
    b1_p = jnp.zeros((1, ep), jnp.float32).at[0, :embed_dim].set(
        b1.astype(jnp.float32))
    w2_p = jnp.zeros((ep, ep), jnp.bfloat16).at[:embed_dim, :embed_dim].set(
        w2.astype(jnp.bfloat16))
    b2_p = jnp.zeros((1, ep), jnp.float32).at[0, :embed_dim].set(
        b2.astype(jnp.float32))

    return dict(w1=w1_p, b1=b1_p, w2=w2_p, b2=b2_p,
                input_dim=int(input_dim), embed_dim=int(embed_dim),
                ep=int(ep))


def embed_fc(x, params, *, out_dtype=jnp.float32, approximate_gelu=False,
             tn_target=512, tcol_target=1024):
    """Pallas EmbedFC.forward: x.view(-1, input_dim) -> Linear-GELU-Linear."""
    input_dim = params["input_dim"]
    embed_dim = params["embed_dim"]
    ep = params["ep"]

    x2d = x.reshape(-1, input_dim).astype(jnp.float32)
    n = x2d.shape[0]

    # --- Row tiling --------------------------------------------------------
    npad = _round_up(n, 16)                # small, sublane-friendly padding
    if npad <= tn_target:
        if npad >= 32:
            tn = _round_up(npad // 2, 16)  # >=2 row tiles -> both v7x TCs work
        else:
            tn = npad
    else:
        tn = tn_target
    n_row_tiles = pl.cdiv(npad, tn)        # cdiv grid: no tile-sized waste

    if npad != n:
        x2d = jnp.pad(x2d, ((0, npad - n), (0, 0)))   # row axis only

    # --- Column tiling of the second linear --------------------------------
    tcol = min(ep, tcol_target)
    n_col_tiles = pl.cdiv(ep, tcol)
    w2_bufs = 1 if n_col_tiles == 1 else 2  # resident vs. streamed over cols
    w2_mode = pl.Buffered(w2_bufs)

    # --- VMEM budget (single-buffered resident weights) --------------------
    out_bytes = jnp.dtype(out_dtype).itemsize
    need = (2 * tn * input_dim * 4          # x tile, double-buffered, f32
            + input_dim * ep * 2            # w1 bf16, single buffer
            + ep * 4                        # b1 f32, single buffer
            + w2_bufs * ep * tcol * 2       # w2 bf16 column block(s)
            + w2_bufs * tcol * 4            # b2 f32
            + 2 * tn * tcol * out_bytes     # out tile, double-buffered
            + tn * ep * 2)                  # h scratch bf16
    vmem_limit = max(32 * 1024 * 1024, int(need * 1.5) + (2 << 20))
    vmem_limit = min(vmem_limit, (_vmem_capacity_bytes() * 7) // 8)

    kernel = functools.partial(_embedfc_kernel,
                               approximate_gelu=approximate_gelu)

    out = pl.pallas_call(
        kernel,
        out_shape=jax.ShapeDtypeStruct((npad, ep), out_dtype),
        grid_spec=pltpu.PrefetchScalarGridSpec(
            num_scalar_prefetch=0,
            grid=(n_row_tiles, n_col_tiles),
            in_specs=[
                # x tile: changes with the row index only.
                pl.BlockSpec((tn, input_dim), lambda i, j: (i, 0)),
                # w1 / b1: constant index map -> VMEM-resident, single buffer.
                pl.BlockSpec((input_dim, ep), lambda i, j: (0, 0),
                             pipeline_mode=pl.Buffered(1)),
                pl.BlockSpec((1, ep), lambda i, j: (0, 0),
                             pipeline_mode=pl.Buffered(1)),
                # w2 / b2: column-blocked; resident (1 buffer) when a single
                # column tile covers EP, streamed (2 buffers) otherwise.
                pl.BlockSpec((ep, tcol), lambda i, j: (0, j),
                             pipeline_mode=w2_mode),
                pl.BlockSpec((1, tcol), lambda i, j: (0, j),
                             pipeline_mode=w2_mode),
            ],
            out_specs=pl.BlockSpec((tn, tcol), lambda i, j: (i, j)),
            scratch_shapes=[pltpu.VMEM((tn, ep), jnp.bfloat16)],
        ),
        compiler_params=pltpu.CompilerParams(
            dimension_semantics=("parallel", "arbitrary"),
            vmem_limit_bytes=vmem_limit,
        ),
    )(x2d, params["w1"], params["b1"], params["w2"], params["b2"])

    return out[:n, :embed_dim]


def _reference(x, w1, b1, w2, b2, *, input_dim):
    x2d = x.reshape(-1, input_dim).astype(jnp.float32)
    h = x2d @ w1.astype(jnp.float32) + b1.astype(jnp.float32)
    h = jax.nn.gelu(h, approximate=False)
    return h @ w2.astype(jnp.float32) + b2.astype(jnp.float32)


if __name__ == "__main__":
    input_dim = 16
    embed_dim = 32

    key = jax.random.PRNGKey(0)
    kx, kw1, kb1, kw2, kb2 = jax.random.split(key, 5)

    # Example input: (2, 4, 16) -> view(-1, 16) gives N = 8 rows.
    x = jax.random.normal(kx, (2, 4, input_dim), dtype=jnp.float32)

    # Parameters built directly in the (in, out) layout the kernel consumes.
    w1 = 0.1 * jax.random.normal(kw1, (input_dim, embed_dim), dtype=jnp.float32)
    b1 = 0.1 * jax.random.normal(kb1, (embed_dim,), dtype=jnp.float32)
    w2 = 0.1 * jax.random.normal(kw2, (embed_dim, embed_dim), dtype=jnp.float32)
    b2 = 0.1 * jax.random.normal(kb2, (embed_dim,), dtype=jnp.float32)

    # Pad / cast parameters once (not on every forward call).
    params = prepare_embedfc_params(w1, b1, w2, b2)

    out = embed_fc(x, params)            # exact erf-GELU, f32 output (default)
    out = jax.block_until_ready(out)

    ref = _reference(x, w1, b1, w2, b2, input_dim=input_dim)
    assert out.shape == (8, embed_dim), out.shape
    # bf16 matmul inputs with f32 accumulation -> slightly looser tolerance.
    assert jnp.allclose(out, ref, atol=2.5e-2, rtol=2.5e-2), (
        float(jnp.max(jnp.abs(out - ref))))

    print("KERNEL_OK")
</pallas_src>

<mosaic_0001>
module attributes {stable_mosaic.version = 11 : i64} {
  func.func @_embedfc_kernel(%arg0: i32, %arg1: i32, %arg2: memref<16x16xf32, #tpu.memory_space<vmem>>, %arg3: memref<16x128xbf16, #tpu.memory_space<vmem>>, %arg4: memref<1x128xf32, #tpu.memory_space<vmem>>, %arg5: memref<128x128xbf16, #tpu.memory_space<vmem>>, %arg6: memref<1x128xf32, #tpu.memory_space<vmem>>, %arg7: memref<16x128xf32, #tpu.memory_space<vmem>>, %arg8: memref<16x128xbf16, #tpu.memory_space<vmem>>) attributes {dimension_semantics = [#tpu.dimension_semantics<parallel>, #tpu.dimension_semantics<arbitrary>], iteration_bounds = array<i64: 1, 1>, scalar_prefetch = 0 : i64, scratch_operands = 1 : i64, tpu.core_type = #tpu.core_type<tc>, window_params = [{transform_indices = @transform_0, window_bounds = array<i64: 16, 16>}, {pipeline_mode = #tpu.pipeline_mode<synchronous>, transform_indices = @transform_1, window_bounds = array<i64: 16, 128>}, {pipeline_mode = #tpu.pipeline_mode<synchronous>, transform_indices = @transform_2, window_bounds = array<i64: 1, 128>}, {pipeline_mode = #tpu.pipeline_mode<synchronous>, transform_indices = @transform_3, window_bounds = array<i64: 128, 128>}, {pipeline_mode = #tpu.pipeline_mode<synchronous>, transform_indices = @transform_4, window_bounds = array<i64: 1, 128>}, {transform_indices = @transform_5, window_bounds = array<i64: 16, 128>}]} {
    %c0_i32 = arith.constant 0 : i32
    %0 = arith.cmpi eq, %arg1, %c0_i32 : i32
    %1 = arith.extui %0 : i1 to i32
    %c0_i32_0 = arith.constant 0 : i32
    %2 = arith.cmpi ne, %1, %c0_i32_0 : i32
    scf.if %2 {
      %c0_8 = arith.constant 0 : index
      %c0_9 = arith.constant 0 : index
      %10 = vector.load %arg2[%c0_8, %c0_9] : memref<16x16xf32, #tpu.memory_space<vmem>>, vector<16x16xf32>
      %11 = arith.truncf %10 : vector<16x16xf32> to vector<16x16xbf16>
      %c0_10 = arith.constant 0 : index
      %c0_11 = arith.constant 0 : index
      %12 = vector.load %arg3[%c0_10, %c0_11] : memref<16x128xbf16, #tpu.memory_space<vmem>>, vector<16x128xbf16>
      %cst_12 = arith.constant dense<0.000000e+00> : vector<16x128xf32>
      %13 = tpu.matmul %11, %12, %cst_12 {dimension_numbers = #tpu.dot_dimension_numbers<[1], [0], [0], [1], [0, 0, 1, 1], [], []>} : vector<16x16xbf16>, vector<16x128xbf16>, vector<16x128xf32> -> vector<16x128xf32>
      %c0_13 = arith.constant 0 : index
      %c0_14 = arith.constant 0 : index
      %14 = vector.load %arg4[%c0_13, %c0_14] : memref<1x128xf32, #tpu.memory_space<vmem>>, vector<1x128xf32>
      %15 = vector.broadcast %14 : vector<1x128xf32> to vector<16x128xf32>
      %16 = arith.addf %13, %15 : vector<16x128xf32>
      %cst_15 = arith.constant 5.000000e-01 : f32
      %17 = vector.broadcast %cst_15 : f32 to vector<16x128xf32>
      %18 = arith.mulf %17, %16 : vector<16x128xf32>
      %cst_16 = arith.constant 0.707106769 : f32
      %19 = vector.broadcast %cst_16 : f32 to vector<16x128xf32>
      %20 = arith.mulf %16, %19 : vector<16x128xf32>
      %21 = math.erf %20 : vector<16x128xf32>
      %cst_17 = arith.constant 1.000000e+00 : f32
      %22 = vector.broadcast %cst_17 : f32 to vector<16x128xf32>
      %23 = arith.addf %22, %21 : vector<16x128xf32>
      %24 = arith.mulf %18, %23 : vector<16x128xf32>
      %25 = arith.truncf %24 : vector<16x128xf32> to vector<16x128xbf16>
      %c0_18 = arith.constant 0 : index
      %c0_19 = arith.constant 0 : index
      %26 = vector.load %arg8[%c0_18, %c0_19] : memref<16x128xbf16, #tpu.memory_space<vmem>>, vector<16x128xbf16>
      tpu.vector_store %arg8[%c0_18, %c0_19], %25 {strides = array<i32>} : memref<16x128xbf16, #tpu.memory_space<vmem>>, vector<16x128xbf16>,
    } else {
    }
    %c0 = arith.constant 0 : index
    %c0_1 = arith.constant 0 : index
    %3 = vector.load %arg8[%c0, %c0_1] : memref<16x128xbf16, #tpu.memory_space<vmem>>, vector<16x128xbf16>
    %c0_2 = arith.constant 0 : index
    %c0_3 = arith.constant 0 : index
    %4 = vector.load %arg5[%c0_2, %c0_3] : memref<128x128xbf16, #tpu.memory_space<vmem>>, vector<128x128xbf16>
    %cst = arith.constant dense<0.000000e+00> : vector<16x128xf32>
    %5 = tpu.matmul %3, %4, %cst {dimension_numbers = #tpu.dot_dimension_numbers<[1], [0], [0], [1], [0, 0, 1, 1], [], []>} : vector<16x128xbf16>, vector<128x128xbf16>, vector<16x128xf32> -> vector<16x128xf32>
    %c0_4 = arith.constant 0 : index
    %c0_5 = arith.constant 0 : index
    %6 = vector.load %arg6[%c0_4, %c0_5] : memref<1x128xf32, #tpu.memory_space<vmem>>, vector<1x128xf32>
    %7 = vector.broadcast %6 : vector<1x128xf32> to vector<16x128xf32>
    %8 = arith.addf %5, %7 : vector<16x128xf32>
    %c0_6 = arith.constant 0 : index
    %c0_7 = arith.constant 0 : index
    %9 = vector.load %arg7[%c0_6, %c0_7] : memref<16x128xf32, #tpu.memory_space<vmem>>, vector<16x128xf32>
    tpu.vector_store %arg7[%c0_6, %c0_7], %8 {strides = array<i32>} : memref<16x128xf32, #tpu.memory_space<vmem>>, vector<16x128xf32>,
    return
  }
  func.func @transform_0(%arg0: i32, %arg1: i32) -> (i32, i32) {
    %c0_i32 = arith.constant 0 : i32
    %c0_i32_0 = arith.constant 0 : i32
    return %arg0, %c0_i32 : i32, i32
  }
  func.func @transform_1(%arg0: i32, %arg1: i32) -> (i32, i32) {
    %c0_i32 = arith.constant 0 : i32
    %c0_i32_0 = arith.constant 0 : i32
    %c0_i32_1 = arith.constant 0 : i32
    return %c0_i32, %c0_i32_0 : i32, i32
  }
  func.func @transform_2(%arg0: i32, %arg1: i32) -> (i32, i32) {
    %c0_i32 = arith.constant 0 : i32
    %c0_i32_0 = arith.constant 0 : i32
    %c0_i32_1 = arith.constant 0 : i32
    return %c0_i32, %c0_i32_0 : i32, i32
  }
  func.func @transform_3(%arg0: i32, %arg1: i32) -> (i32, i32) {
    %c0_i32 = arith.constant 0 : i32
    %c0_i32_0 = arith.constant 0 : i32
    return %c0_i32, %arg1 : i32, i32
  }
  func.func @transform_4(%arg0: i32, %arg1: i32) -> (i32, i32) {
    %c0_i32 = arith.constant 0 : i32
    %c0_i32_0 = arith.constant 0 : i32
    return %c0_i32, %arg1 : i32, i32
  }
  func.func @transform_5(%arg0: i32, %arg1: i32) -> (i32, i32) {
    %c0_i32 = arith.constant 0 : i32
    return %arg0, %arg1 : i32, i32
  }
}

</mosaic_0001>

<bundles_post_ra>
// kernel: tpu_custom_call.1
= control target key start
LH: loop header
LB: loop body
LE: loop exit
PB: predicated region body
PF: predicated region fallthrough
CT: control target
= control target key end

     0   :  { %10 = vsyncpa [#allocation4], 0  ;;  %s523_s0 = inlined_call_operand.hbm [shape: f32[16,16], index: 0, kind: input, shape index: {}]   ;;  %s524_s1 = inlined_call_operand.hbm [shape: bf16[16,128], index: 1, kind: input, shape index: {}]   ;;  %s525_s2 = inlined_call_operand.vmem [shape: f32[1,128], index: 2, kind: input, shape index: {}]   ;;  %s526_s3 = inlined_call_operand.hbm [shape: bf16[128,128], index: 3, kind: input, shape index: {}]   ;;  %s527_s4 = inlined_call_operand.vmem [shape: f32[1,128], index: 4, kind: input, shape index: {}]   ;;  %s528_s5 = inlined_call_operand.hbm [shape: f32[16,128], index: 5, kind: output, shape index: {}]  }
   0x1   :  { %11 = vsyncpa [#allocation7], 0 }
   0x2   :  { %12 = vsyncpa [#allocation5], 0  ;;  %s459_s18 = smov [#allocation6]  }
   0x3   :  { %s30_s19 = sshll.u32 %s459_s18, 4  ;;  %s31_s19 = int_to_ptr.vmem [resolvable:$true] %s30_s19 }
   0x4   :  { %s381_s20 = scalar_lea.vmem %s31_s19, 128  ;;  %p386_p1 = scmp.lt.s32.totalorder %s31_s19, %s31_s19 }
   0x5   :  { %p382_p0 = scmp.ne.s32.totalorder %s31_s19, %s381_s20  ;;  %p387_p2 = scmp.lt.s32.totalorder %s381_s20, %s381_s20 }
   0x7   :  { %p388_p3 = por %p387_p2, %p386_p1 }
   0x9   :  { %p389_p4 = pnand %p388_p3, %p382_p0 }
   0xb   :  { %392 = shalt.err (!%p389_p4)
}
   0xc   :  { %s460_s21 = smov 64   ;;  %s461_s22 = smov 4  }
   0xd   :  { %36 = dma.hbm_to_vmem [thread:$0]  %s524_s1, 128, %s31_s19, [#allocation7], %s460_s21, %s460_s21, %s461_s22  }
   0xe   :  { %s462_s25 = smov [#allocation3]  }
   0xf   :  { %s18_s26 = sshll.u32 %s462_s25, 4  ;;  %s19_s26 = int_to_ptr.vmem [resolvable:$true] %s18_s26 }
  0x10   :  { %s401_s27 = scalar_lea.vmem %s19_s26, 256  ;;  %p406_p6 = scmp.lt.s32.totalorder %s19_s26, %s19_s26 }
  0x11   :  { %p402_p5 = scmp.ne.s32.totalorder %s19_s26, %s401_s27  ;;  %p407_p7 = scmp.lt.s32.totalorder %s401_s27, %s401_s27 }
  0x13   :  { %p408_p8 = por %p407_p7, %p406_p6 }
  0x15   :  { %p409_p9 = pnand %p408_p8, %p402_p5 }
  0x17   :  { %412 = shalt.err (!%p409_p9)
}
  0x18   :  { %s463_s28 = smov 128   ;;  %s464_s29 = smov 8  }
  0x19   :  { %24 = dma.hbm_to_vmem [thread:$0]  %s523_s0, 256, %s19_s26, [#allocation4], %s463_s28, %s463_s28, %s464_s29  }
  0x1a   :  { %s465_s1 = smov [#allocation8]  }
  0x1b   :  { %s44_s7 = sshll.u32 %s465_s1, 4  ;;  %s45_s7 = int_to_ptr.vmem [resolvable:$true] %s44_s7 }
  0x1c   :  { %s421_s8 = scalar_lea.vmem %s45_s7, 1024  ;;  %p426_p11 = scmp.lt.s32.totalorder %s45_s7, %s45_s7 }
  0x1d   :  { %p422_p10 = scmp.ne.s32.totalorder %s45_s7, %s421_s8  ;;  %p427_p12 = scmp.lt.s32.totalorder %s421_s8, %s421_s8 }
  0x1f   :  { %p428_p13 = por %p427_p12, %p426_p11 }
  0x21   :  { %p429_p0 = pnand %p428_p13, %p422_p10 }
  0x23   :  { %432 = shalt.err (!%p429_p0)
}
  0x24   :  { %50 = dma.hbm_to_vmem [thread:$0]  %s526_s3, 1024, %s45_s7, [#allocation7], %s460_s21, %s460_s21, %s461_s22  }
  0x25   :  { %453 = dma.done.wait [#allocation4], 256  }
  0x26   :  { %454 = vsyncadd [#allocation4], 4294967040 }
  0x27   :  { %455 = dma.done.wait [#allocation7], 1152  }
  0x28   :  { %456 = vsyncadd [#allocation7], 4294966144  ;;  %v466_v0 = vmov 0.0   ;;  %vm467_vm0 = vmmov 0   ;;  %v359_v1 = vld [vmem:[#allocation6] sm:$0xff]   ;;  %v67_v2 = vld [vmem:[#allocation3] sm:$0xff] }
  0x29   :  { %323 = vmatprep.subr.bf16.mxu0 %v466_v0  ;;  %325 = vmatprep.mubr.msk.bf16.mxu0 %vm467_vm0, %v466_v0  ;;  %v68_v3 = vld [vmem:[#allocation3 + $0x8] sm:$0xff]  ;;  %vm85_vm1 = vcmask 130048   ;;  %v360_v5 = vld [vmem:[#allocation8 + $0x38] sm:$0xff]   ;;  %v362_v7 = vld [vmem:[#allocation8 + $0x28] sm:$0xff]   ;;  %s468_s12 = smov [#allocation9]  }
  0x2a   :  { %329 = vmatprep.subr.bf16.mxu1 %v466_v0  ;;  %345 = vmatprep.mubr.msk.bf16.mxu1 %vm467_vm0, %v466_v0  ;;  %v69_v4 = vpack.c.bf16 %v68_v3, %v67_v2  ;;  %v361_v6 = vld [vmem:[#allocation8 + $0x30] sm:$0xff]   ;;  %v363_v8 = vld [vmem:[#allocation8 + $0x20] sm:$0xff]   ;;  %v364_v9 = vld [vmem:[#allocation8 + $0x18] sm:$0xff]   ;;  %s277_s13 = sshll.u32 %s468_s12, 4  ;;  %s278_s13 = int_to_ptr.vmem [resolvable:$true] %s277_s13 }
  0x2b   :  { %324 = vmatpush3.bf16.msra.mxu0 %v359_v1  ;;  %330 = vmatpush3.bf16.msra.mxu1 %v360_v5  ;;  %v365_v10 = vld [vmem:[#allocation8 + $0x10] sm:$0xff]   ;;  %v366_v11 = vld [vmem:[#allocation8 + $0x8] sm:$0xff]   ;;  %v367_v12 = vld [vmem:[#allocation8] sm:$0xff]   ;;  %s433_s14 = scalar_lea.vmem %s278_s13, 256  ;;  %p438_p2 = scmp.lt.s32.totalorder %s278_s13, %s278_s13 }
  0x2c   :  { %331 = vmatprep.subr.bf16.mxu1 %v466_v0  ;;  %v290_v13 = vld [vmem:[%s525_s2] ss:$0 sm:$0xff]  ;;  %p434_p1 = scmp.ne.s32.totalorder %s278_s13, %s433_s14  ;;  %p439_p3 = scmp.lt.s32.totalorder %s433_s14, %s433_s14 }
  0x2d   :  { %v295_v32 = vld [vmem:[%s527_s4] ss:$0 sm:$0xff] }
  0x2e   :  { %326 = vmatmul.mubr.msk.bf16.vlgmr.msra.gmra.mxu0 %vm85_vm1, %v69_v4  ;;  %p440_p4 = por %p439_p3, %p438_p2 }
  0x2f   :  { %332 = vmatpush3.bf16.msra.mxu1 %v361_v6 }
  0x30   :  { %333 = vmatprep.subr.bf16.mxu1 %v466_v0  ;;  %p441_p5 = pnand %p440_p4, %p434_p1 }
  0x33   :  { %334 = vmatpush3.bf16.msra.mxu1 %v362_v7 }
  0x34   :  { %335 = vmatprep.subr.bf16.mxu1 %v466_v0 }
  0x37   :  { %336 = vmatpush3.bf16.msra.mxu1 %v363_v8 }
  0x38   :  { %337 = vmatprep.subr.bf16.mxu1 %v466_v0 }
  0x3b   :  { %338 = vmatpush3.bf16.msra.mxu1 %v364_v9 }
  0x3c   :  { %339 = vmatprep.subr.bf16.mxu1 %v466_v0 }
  0x3f   :  { %340 = vmatpush3.bf16.msra.mxu1 %v365_v10 }
  0x40   :  { %341 = vmatprep.subr.bf16.mxu1 %v466_v0 }
  0x43   :  { %342 = vmatpush3.bf16.msra.mxu1 %v366_v11 }
  0x44   :  { %343 = vmatprep.subr.bf16.mxu1 %v466_v0 }
  0x47   :  { %344 = vmatpush3.bf16.msra.mxu1 %v367_v12 }
  0xee   :  { %v123_v14 = vpop.f32.mrf.mxu0 }
  0xef   :  { %v124_v15 = vadd.f32 %v290_v13, %v123_v14 }
  0xf0   :  { %v327_v16 = vpop.f32.mrf.mxu0 }
  0xf1   :  { %v132_v17 = vmul.f32 0.70710677, %v124_v15  ;;  %v130_v25 = vmul.f32 0.5, %v124_v15 }
  0xf2   :  { %v126_v18 = vpop.f32.mrf.mxu0 }
  0xf3   :  { %369 = verf.f32 %v132_v17  ;;  %v127_v19 = vadd.f32 %v290_v13, %v126_v18 }
  0xf4   :  { %v328_v20 = vpop.f32.mrf.mxu0 }
  0xf5   :  { %v133_v21 = vmul.f32 0.70710677, %v127_v19  ;;  %v131_v26 = vmul.f32 0.5, %v127_v19 }
  0xf7   :  { %371 = verf.f32 %v133_v21 }
 0x100   :  { %v370_v22 = vpop.eup %369 }
 0x101   :  { %v136_v23 = vadd.f32 1.0, %v370_v22 }
 0x103   :  { %v138_v28 = vmul.f32 %v136_v23, %v130_v25 }
 0x104   :  { %v372_v24 = vpop.eup %371 }
 0x105   :  { %v137_v27 = vadd.f32 1.0, %v372_v24 }
 0x107   :  { %v139_v29 = vmul.f32 %v137_v27, %v131_v26 }
 0x109   :  { %v310_v30 = vpack.c.bf16 %v139_v29, %v138_v28 }
 0x10b   :  { %311 = vst [vmem:[#allocation2] sm:$0xff] %v310_v30  }
 0x112   :  { %v368_v31 = vld [vmem:[#allocation2] sm:$0xff]  }
 0x113   :  { %346 = vmatmul.mubr.bf16.vlgmr.msra.gmra.mxu1 %v368_v31 }
 0x1d3   :  { %v263_v33 = vpop.f32.mrf.mxu1 }
 0x1d4   :  { %v264_v34 = vadd.f32 %v295_v32, %v263_v33 }
 0x1d5   :  { %v347_v35 = vpop.f32.mrf.mxu1 }
 0x1d6   :  { %270 = vst [vmem:[#allocation9] sm:$0xff] %v264_v34 }
 0x1d7   :  { %v266_v36 = vpop.f32.mrf.mxu1 }
 0x1d8   :  { %v267_v37 = vadd.f32 %v295_v32, %v266_v36 }
 0x1d9   :  { %v348_v38 = vpop.f32.mrf.mxu1 }
 0x1da   :  { %271 = vst [vmem:[#allocation9 + $0x8] sm:$0xff] %v267_v37 }
 0x1db   :  { %444 = shalt.err (!%p441_p5)
}
 0x1dc   :  { %283 = dma.vmem_to_hbm [thread:$0]  %s278_s13, 256, %s528_s5, [#allocation5], %s463_s28, %s463_s28, %s464_s29  }
 0x1dd   :  { %457 = dma.done.wait [#allocation5], 256  }
 0x1de   :  { %458 = vsyncadd [#allocation5], 4294967040 }
 0x1df   :  { %287 = vsyncpa [#allocation4], 1 }
 0x1e0   :  { %288 = vsyncpa [#allocation7], 1 }
 0x1e1   :  { %289 = vsyncpa [#allocation5], 1 }

</bundles_post_ra>
